<compile_context>
chip_gen: v6e
topology: v6e:2x2x1
jax: 0.10.0
libtpu: 0.0.40
codegen_flags: <defaults>
</compile_context>

<pallas_src>
import jax
import jax.numpy as jnp
from jax.experimental import pallas as pl
from jax.experimental.pallas import tpu as pltpu


Z_TYPICAL = {4: (0.077, 1.013), 8: (0.027, 1.114)}
_LANE = 128
_SUBLANE = 8


def _round_up(a: int, b: int) -> int:
    return ((a + b - 1) // b) * b


def _make_wq_kernel(wbit: int, n_true: int):
    z0, z1 = Z_TYPICAL[wbit]
    n_lv = float(2 ** (wbit - 1) - 1)      # 7 for 4-bit, 127 for 8-bit
    ub_int, lb_int = 6.0, -3.0             # WeightQuant clamp bounds (wbit-independent)
    inv_z0 = 1.0 / z0
    z1_over_z0 = z1 / z0
    n = float(n_true)
    inv_n = 1.0 / n
    inv_nm1 = 1.0 / (n - 1.0)

    def wq_kernel(x_ref, o_ref, alpha_ref):
        x = x_ref[...].astype(jnp.float32)                  # (TO, n_pad); pad cols are 0
        # Single elementwise pass: |x|, x, x*x reduced together (zero pads add 0).
        s_abs = jnp.sum(jnp.abs(x), axis=1, keepdims=True)
        s = jnp.sum(x, axis=1, keepdims=True)
        s_sq = jnp.sum(x * x, axis=1, keepdims=True)
        m = s_abs * inv_n                                   # mean(|x|)
        mu = s * inv_n
        var = (s_sq - n * mu * mu) * inv_nm1                # unbiased (torch.std, ddof=1)
        std = jnp.sqrt(var)
        alpha = inv_z0 * std - z1_over_z0 * m               # (TO, 1)
        # NOTE: alpha <= 0 for degenerate channels yields inf/NaN, same as PyTorch.
        xc = jnp.maximum(jnp.minimum(x, alpha), -alpha)     # clamp to [-alpha, alpha]
        scale = n_lv / alpha                                # per-channel only (TO, 1)
        inv_scale = alpha / n_lv                            # per-channel only (TO, 1)
        xi = jnp.clip(jnp.round(xc * scale), lb_int, ub_int)
        o_ref[...] = (xi * inv_scale).astype(o_ref.dtype)   # multiply, not per-elem divide
        alpha_ref[...] = alpha.astype(alpha_ref.dtype)

    return wq_kernel


def _choose_tile_o(O: int, n_pad: int, dtype_bytes: int,
                   target_block_bytes: int = 2 * 1024 * 1024) -> int:
    # Biggest row tile whose (tile_o, n_pad) block stays near ~2 MiB so that
    # input + output double-buffering (~4x block) fits v5e's 16 MiB scoped-VMEM
    # default and v7x's 32 MiB default / 64 MiB physical with headroom.
    rows = max(_SUBLANE, target_block_bytes // (n_pad * dtype_bytes))
    rows = (rows // _SUBLANE) * _SUBLANE
    tile_o = min(rows, _round_up(O, _SUBLANE))
    # Keep >= 2 grid steps when possible so both v7x TensorCores get work.
    if tile_o >= O and O > _SUBLANE:
        tile_o = _round_up(pl.cdiv(O, 2), _SUBLANE)
    return max(tile_o, _SUBLANE)


def wq_forward(x, wbit: int = 4, tile_o=None, return_alpha: bool = False):
    """Channel-wise weight quantization (WQ.forward with channel_wise=1).

    x: (O, C, H, W) weight tensor.  Returns quantized-dequantized weights of
    the same shape/dtype (and optionally the per-channel alpha_w buffer).
    """
    # TODO(synk): only the channel_wise=1 path of WQ is implemented; the
    # channel_wise=0 path (global stats + RoundQuant, no int clamp) is a
    # separate scalar-stat kernel and is not emitted here.
    O, C, H, W = x.shape
    n = C * H * W
    dtype_bytes = jnp.dtype(x.dtype).itemsize

    n_pad = _round_up(n, _LANE)                 # lane-dense last dim -> unmasked stores
    if tile_o is None:
        tile_o = _choose_tile_o(O, n_pad, dtype_bytes)
    O_pad = _round_up(O, tile_o)

    x2d = x.reshape(O, n)
    x2d = jnp.pad(x2d, ((0, O_pad - O), (0, n_pad - n)))    # zero pads keep sums exact

    kernel = _make_wq_kernel(wbit, n)
    grid = (O_pad // tile_o,)
    block_bytes = tile_o * n_pad * dtype_bytes
    # input + output blocks, both double-buffered, plus slack for the alpha column.
    vmem_limit = min(max(4 * block_bytes + (4 << 20), 16 << 20), 32 << 20)

    out2d, alpha = pl.pallas_call(
        kernel,
        out_shape=(jax.ShapeDtypeStruct((O_pad, n_pad), x.dtype),
                   jax.ShapeDtypeStruct((O_pad, 1), jnp.float32)),
        grid_spec=pltpu.PrefetchScalarGridSpec(
            num_scalar_prefetch=0,
            grid=grid,
            in_specs=[pl.BlockSpec((tile_o, n_pad), lambda i: (i, 0))],
            out_specs=(pl.BlockSpec((tile_o, n_pad), lambda i: (i, 0)),
                       pl.BlockSpec((tile_o, 1), lambda i: (i, 0))),
        ),
        compiler_params=pltpu.CompilerParams(
            dimension_semantics=("parallel",),
            vmem_limit_bytes=int(vmem_limit)),
    )(x2d)

    out = out2d[:O, :n].reshape(O, C, H, W)
    if return_alpha:
        return out, alpha[:O, 0]
    return out


if __name__ == "__main__":
    key = jax.random.PRNGKey(0)
    # conv-weight-like tensor: (num_features=16, in_ch=4, kH=3, kW=3)
    x = jax.random.normal(key, (16, 4, 3, 3), dtype=jnp.float32) * 0.1

    wbit = 4
    y, alpha_k = wq_forward(x, wbit=wbit, return_alpha=True)
    y = jax.block_until_ready(y)
    alpha_k = jax.block_until_ready(alpha_k)

    # --- sanity checks against the module's math (pure JAX reference) ---
    z0, z1 = Z_TYPICAL[wbit]
    n_lv = float(2 ** (wbit - 1) - 1)
    xf = x.reshape(x.shape[0], -1)

    # 1) per-channel alpha_w matches the module formula (mean|x|, unbiased std).
    m_ref = jnp.mean(jnp.abs(xf), axis=1)
    std_ref = jnp.std(xf, axis=1, ddof=1)
    alpha_ref = (1.0 / z0) * std_ref - (z1 / z0) * m_ref
    assert jnp.allclose(alpha_k, alpha_ref, rtol=1e-4, atol=1e-6), "alpha_w mismatch"

    # 2) clamp / quantize / dequantize path checked with the kernel's own alpha
    #    so ulp-level reduction-order differences cannot flip a rounding boundary.
    a = alpha_k[:, None]
    xc = jnp.maximum(jnp.minimum(xf, a), -a)
    scale = n_lv / a
    ref = (jnp.clip(jnp.round(xc * scale), -3.0, 6.0) * (a / n_lv)).reshape(x.shape)
    assert jnp.allclose(y, ref, atol=1e-6, rtol=1e-6), "quantized output mismatch"

    print("KERNEL_OK")
</pallas_src>

<mosaic_0001>
module attributes {stable_mosaic.version = 11 : i64} {
  func.func @wq_kernel(%arg0: i32, %arg1: memref<8x128xf32, #tpu.memory_space<vmem>>, %arg2: memref<8x128xf32, #tpu.memory_space<vmem>>, %arg3: memref<8x1xf32, #tpu.memory_space<vmem>>) attributes {dimension_semantics = [#tpu.dimension_semantics<parallel>], iteration_bounds = array<i64: 2>, scalar_prefetch = 0 : i64, scratch_operands = 0 : i64, tpu.core_type = #tpu.core_type<tc>, window_params = [{transform_indices = @transform_0, window_bounds = array<i64: 8, 128>}, {transform_indices = @transform_1, window_bounds = array<i64: 8, 128>}, {transform_indices = @transform_2, window_bounds = array<i64: 8, 1>}]} {
    %c0 = arith.constant 0 : index
    %c0_0 = arith.constant 0 : index
    %0 = vector.load %arg1[%c0, %c0_0] : memref<8x128xf32, #tpu.memory_space<vmem>>, vector<8x128xf32>
    %1 = math.absf %0 : vector<8x128xf32>
    %cst = arith.constant dense<0.000000e+00> : vector<8xf32>
    %2 = vector.multi_reduction <add>, %1, %cst [1] : vector<8x128xf32> to vector<8xf32>
    %3 = vector.shape_cast %2 : vector<8xf32> to vector<8x1xf32>
    %cst_1 = arith.constant dense<0.000000e+00> : vector<8xf32>
    %4 = vector.multi_reduction <add>, %0, %cst_1 [1] : vector<8x128xf32> to vector<8xf32>
    %5 = vector.shape_cast %4 : vector<8xf32> to vector<8x1xf32>
    %6 = arith.mulf %0, %0 : vector<8x128xf32>
    %cst_2 = arith.constant dense<0.000000e+00> : vector<8xf32>
    %7 = vector.multi_reduction <add>, %6, %cst_2 [1] : vector<8x128xf32> to vector<8xf32>
    %8 = vector.shape_cast %7 : vector<8xf32> to vector<8x1xf32>
    %cst_3 = arith.constant 0.027777778 : f32
    %9 = vector.broadcast %cst_3 : f32 to vector<8x1xf32>
    %10 = arith.mulf %3, %9 : vector<8x1xf32>
    %cst_4 = arith.constant 0.027777778 : f32
    %11 = vector.broadcast %cst_4 : f32 to vector<8x1xf32>
    %12 = arith.mulf %5, %11 : vector<8x1xf32>
    %cst_5 = arith.constant 3.600000e+01 : f32
    %13 = vector.broadcast %cst_5 : f32 to vector<8x1xf32>
    %14 = arith.mulf %13, %12 : vector<8x1xf32>
    %15 = arith.mulf %14, %12 : vector<8x1xf32>
    %16 = arith.subf %8, %15 : vector<8x1xf32>
    %cst_6 = arith.constant 0.0285714287 : f32
    %17 = vector.broadcast %cst_6 : f32 to vector<8x1xf32>
    %18 = arith.mulf %16, %17 : vector<8x1xf32>
    %19 = math.sqrt %18 : vector<8x1xf32>
    %cst_7 = arith.constant 12.9870129 : f32
    %20 = vector.broadcast %cst_7 : f32 to vector<8x1xf32>
    %21 = arith.mulf %20, %19 : vector<8x1xf32>
    %cst_8 = arith.constant 13.1558437 : f32
    %22 = vector.broadcast %cst_8 : f32 to vector<8x1xf32>
    %23 = arith.mulf %22, %10 : vector<8x1xf32>
    %24 = arith.subf %21, %23 : vector<8x1xf32>
    %25 = vector.broadcast %24 : vector<8x1xf32> to vector<8x128xf32>
    %26 = arith.minimumf %0, %25 : vector<8x128xf32>
    %cst_9 = arith.constant 0.000000e+00 : f32
    %27 = vector.broadcast %cst_9 : f32 to vector<8x1xf32>
    %28 = arith.subf %27, %24 : vector<8x1xf32>
    %29 = vector.broadcast %28 : vector<8x1xf32> to vector<8x128xf32>
    %30 = arith.maximumf %26, %29 : vector<8x128xf32>
    %cst_10 = arith.constant 7.000000e+00 : f32
    %31 = vector.broadcast %cst_10 : f32 to vector<8x1xf32>
    %32 = arith.divf %31, %24 : vector<8x1xf32>
    %cst_11 = arith.constant 7.000000e+00 : f32
    %33 = vector.broadcast %cst_11 : f32 to vector<8x1xf32>
    %34 = arith.divf %24, %33 : vector<8x1xf32>
    %35 = vector.broadcast %32 : vector<8x1xf32> to vector<8x128xf32>
    %36 = arith.mulf %30, %35 : vector<8x128xf32>
    %37 = math.roundeven %36 : vector<8x128xf32>
    %cst_12 = arith.constant -3.000000e+00 : f32
    %cst_13 = arith.constant 6.000000e+00 : f32
    %38 = vector.broadcast %cst_12 : f32 to vector<8x128xf32>
    %39 = arith.maximumf %38, %37 : vector<8x128xf32>
    %40 = vector.broadcast %cst_13 : f32 to vector<8x128xf32>
    %41 = arith.minimumf %40, %39 : vector<8x128xf32>
    %42 = vector.broadcast %34 : vector<8x1xf32> to vector<8x128xf32>
    %43 = arith.mulf %41, %42 : vector<8x128xf32>
    %c0_14 = arith.constant 0 : index
    %c0_15 = arith.constant 0 : index
    %44 = vector.load %arg2[%c0_14, %c0_15] : memref<8x128xf32, #tpu.memory_space<vmem>>, vector<8x128xf32>
    tpu.vector_store %arg2[%c0_14, %c0_15], %43 {strides = array<i32>} : memref<8x128xf32, #tpu.memory_space<vmem>>, vector<8x128xf32>,
    %c0_16 = arith.constant 0 : index
    %c0_17 = arith.constant 0 : index
    %45 = vector.load %arg3[%c0_16, %c0_17] : memref<8x1xf32, #tpu.memory_space<vmem>>, vector<8x1xf32>
    tpu.vector_store %arg3[%c0_16, %c0_17], %24 {strides = array<i32>} : memref<8x1xf32, #tpu.memory_space<vmem>>, vector<8x1xf32>,
    return
  }
  func.func @transform_0(%arg0: i32) -> (i32, i32) {
    %c0_i32 = arith.constant 0 : i32
    %c0_i32_0 = arith.constant 0 : i32
    return %arg0, %c0_i32 : i32, i32
  }
  func.func @transform_1(%arg0: i32) -> (i32, i32) {
    %c0_i32 = arith.constant 0 : i32
    %c0_i32_0 = arith.constant 0 : i32
    return %arg0, %c0_i32 : i32, i32
  }
  func.func @transform_2(%arg0: i32) -> (i32, i32) {
    %c0_i32 = arith.constant 0 : i32
    %c0_i32_0 = arith.constant 0 : i32
    return %arg0, %c0_i32 : i32, i32
  }
}

</mosaic_0001>

<bundles_post_ra>
// kernel: tpu_custom_call.1
= control target key start
LH: loop header
LB: loop body
LE: loop exit
PB: predicated region body
PF: predicated region fallthrough
CT: control target
= control target key end

     0   :  { %8 = vsyncpa [#allocation3], 0  ;;  %s657_s0 = inlined_call_operand.hbm [shape: f32[16,128], index: 0, kind: input, shape index: {}]   ;;  %s658_s1 = inlined_call_operand.hbm [shape: f32[16,128], index: 1, kind: output, shape index: {0}]   ;;  %s659_s2 = inlined_call_operand.vmem [shape: f32[16,1], index: 2, kind: output, shape index: {1}]  }
   0x1   :  { %10 = vsyncpa [#allocation3 + $0x1], 0 }
   0x2   :  { %11 = vsyncpa [#allocation4], 0 }
   0x3   :  { %13 = vsyncpa [#allocation4 + $0x1], 0  ;;  %s507_s9 = smov 0   ;;  %s509_s10 = smov 0  }
   0x4   :  { %s511_s11 = smov 0   ;;  %s513_s12 = smov 0  }
   0x5 LB: > { %s528_s13 = sadd.s32 4294967295, %s488_s12   ;;  %s325_s14 = sadd.s32 4294967294, %s488_s12   ;;  %s488_s12 = sphi %s513_s12, %s676_s12   ;;  %s484_s11 = sphi %s511_s11, %s675_s11   ;;  %s480_s10 = sphi %s509_s10, %s674_s10   ;;  %s476_s9 = sphi %s507_s9, %s673_s9  }
   0x6   : > { %s532_s15 = sadd.s32 1, %s488_s12   ;;  %s26_s16 = sadd.s32 1, %s484_s11 }
   0x7   : > { %s23_s17 = ssub.s32 %s488_s12, %s532_s15  ;;  %p33_p0 = scmp.ne.s32.totalorder %s484_s11, %s480_s10 }
   0x8   : > { %p24_p1 = scmp.eq.s32.totalorder %s23_s17, 0  ;;  %p34_p2 = scmp.eq.s32.totalorder %s488_s12, 0 }
   0x9   : > { %p39_p3 = scmp.ne.s32.totalorder %s480_s10, %s476_s9  ;;  %p40_p4 = scmp.eq.s32.totalorder %s528_s13, 0 }
   0xa   : > { %s544_s18 = scalar_select %p24_p1, %s484_s11, %s26_s16  }
   0xb   : > { %p546_p5 = por %p34_p2, %p33_p0  ;;  %p550_p6 = por %p40_p4, %p39_p3 }
   0xc   : > { %p63_p7 = scmp.eq.s32.totalorder %s528_s13, 1  ;;  %p69_p8 = scmp.eq.s32.totalorder %s325_s14, 1 }
   0xd   : > { %s663_s20 = scalar_select %p550_p6, 1, 0 }
   0xe   : > { %p358_p10 = scmp.lt.s32.totalorder %s488_s12, 2  ;;  %p557_p11 = por %p63_p7, %p33_p0 }
   0xf   : > { %p561_p12 = por %p69_p8, %p39_p3  ;;  %s115_s23 = sand.u32 1, %s484_s11  }
  0x10   : > { %s664_s21 = scalar_select %p557_p11, 1, 0 }
  0x11   : > { %s665_s22 = scalar_select %p561_p12, 1, 0 }
  0x12   : > { %s329_s24 = sshll.u32 %s488_s12, 7  ;;  %s328_s25 = sshll.u32 %s115_s23, 3 }
  0x13   : > { %s570_s28 = scalar_lea.hbm %s657_s0, %s329_s24  ;;  %s119_s29 = scalar_lea.vmem [#allocation2], %s328_s25 }
  0x14   : > { %s126_s30 = sshll.u32 %s119_s29, 4  ;;  %p574_p13 = pnand %p358_p10, %p546_p5  ;;  %s578_s30 = int_to_ptr.vmem [resolvable:$true] %s126_s30 }
  0x15   : > { %s116_s4 = scalar_lea.sflag [#allocation3], %s115_s23  ;;  %s396_s5 = scalar_lea.hbm %s570_s28, 128 }
  0x16   : > { %p397_p2 = scmp.ne.s32.totalorder %s570_s28, %s396_s5  ;;  %p398_p3 = pneg %p574_p13 }
  0x17   : > { %s401_s8 = scalar_lea.hbm %s657_s0, 256  ;;  %p402_p5 = scmp.lt.s32.totalorder %s570_s28, %s657_s0 }
  0x18   : > { %p399_p4 = pnand %p398_p3, %p397_p2  ;;  %p403_p8 = scmp.lt.s32.totalorder %s401_s8, %s396_s5 }
  0x1a   : > { %p400_p7 = pneg %p399_p4  ;;  %p404_p10 = por %p403_p8, %p402_p5 }
  0x1c   : > { %p405_p9 = pnand %p404_p10, %p400_p7 }
  0x1e   : > { %408 = shalt.err (!%p405_p9)
}
  0x1f   : > { %s409_s17 = scalar_lea.vmem %s578_s30, 128  ;;  %s490_s19 = smov [#allocation2]  }
  0x20   : > { %p410_p0 = scmp.ne.s32.totalorder %s578_s30, %s409_s17  ;;  %s414_s23 = sshll.u32 %s490_s19, 4  ;;  %s415_s23 = int_to_ptr.vmem [resolvable:$false] %s414_s23 }
  0x21   : > { %s416_s24 = scalar_lea.vmem %s415_s23, 256  ;;  %p417_p4 = scmp.lt.s32.totalorder %s578_s30, %s415_s23 }
  0x22   : > { %p412_p1 = pnand %p410_p0, %p398_p3  ;;  %p418_p12 = scmp.lt.s32.totalorder %s416_s24, %s409_s17 }
  0x24   : > { %p413_p2 = pneg %p412_p1  ;;  %p419_p11 = por %p418_p12, %p417_p4 }
  0x26   : > { %p420_p6 = pnand %p419_p11, %p413_p2 }
  0x28   : > { %423 = shalt.err (!%p420_p6)
}
  0x29   : > { %353 = dma.hbm_to_vmem [thread:$0]  (!%p574_p13), %s570_s28, 128, %s578_s30, %s116_s4  }
  0x2a   : > { %p667_p9 = scmp.lt.s32.totalorder %s488_s12, 3  ;;  %p668_p7 = scmp.ge.s32.totalorder %s488_s12, 1 }
  0x2c   : > { %p132_p0 = pnand %p668_p7, %p667_p9 }
  0x2d   : > { %s605_s25 = sand.u32 (!%p132_p0), 1, %s480_s10   ;;  %p669_p6 = scmp.ne.s32.totalorder (!%p132_p0), %s663_s20, 0 }
  0x2e   : > { %135 = sbr.rel (%p132_p0) target bundleno = 269 (0x10d), region = 24  ;;  %s331_s26 = sshll.u32 (!%p132_p0), %s605_s25, 3 }
  0x2f   : > { %s138_s27 = scalar_lea.sflag (!%p132_p0), [#allocation3], %s605_s25  ;;  %s141_s29 = scalar_lea.vmem (!%p132_p0), [#allocation2], %s331_s26 }
  0x33   : > { %467 = dma.done.wait (%p669_p6), %s138_s27, 128  }
  0x34   : > { %469 = vsyncadd (%p669_p6), %s138_s27, 4294967168  ;;  %v170_v0 = vld [vmem:[%s141_s29] sm:$0xff]  ;;  %p166_p11 = scmp.lt.s32.totalorder %s528_s13, 1  ;;  %vm208_vm2 = vcmask 7168   ;;  %s335_s5 = sshll.u32 %s528_s13, 7 }
  0x35   : > { %174 = vadd.xlane.f32.xlu0 %v170_v0  ;;  %v176_v1 = vmul.f32 %v170_v0, %v170_v0  ;;  %v171_v2 = vand.u32 2147483647, %v170_v0  ;;  %s159_s6 = scalar_lea.vmem [#allocation5], %s331_s26  ;;  %s226_s16 = scalar_lea.hbm %s658_s1, %s335_s5 }
  0x36   : > { %s167_s20 = scalar_select %p166_p11, %s528_s13, 1 }
  0x37   : > { %172 = vadd.xlane.f32.xlu1 %v171_v2  ;;  %s228_s7 = sshll.u32 %s159_s6, 4  ;;  %s211_s17 = scalar_lea.sflag [#allocation4], %s605_s25  ;;  %s229_s7 = int_to_ptr.vmem [resolvable:$true] %s228_s7 }
  0x38   : > { %s333_s28 = sshll.u32 %s167_s20, 3  ;;  %s424_s19 = scalar_lea.vmem %s229_s7, 128 }
  0x39   : > { %177 = vadd.xlane.f32.xlu0 %v176_v1  ;;  %s169_s4 = scalar_lea.vmem %s659_s2, %s333_s28  ;;  %p425_p12 = scmp.ne.s32.totalorder %s229_s7, %s424_s19 }
  0x3a   : > { %p670_p13 = scmp.ne.s32.totalorder %s664_s21, 0  ;;  %s491_s23 = smov [#allocation5]  }
  0x3b   : > { %s428_s13 = sshll.u32 %s491_s23, 4  ;;  %s429_s13 = int_to_ptr.vmem [resolvable:$false] %s428_s13 }
  0x3c   : > { %p426_p1 = pnand %p425_p12, %p670_p13  ;;  %s430_s24 = scalar_lea.vmem %s429_s13, 256 }
  0x3d   : > { %p431_p5 = scmp.lt.s32.totalorder %s229_s7, %s429_s13  ;;  %p432_p8 = scmp.lt.s32.totalorder %s430_s24, %s424_s19 }
  0x3e   : > { %p427_p3 = pneg %p426_p1 }
  0x3f   : > { %p433_p10 = por %p432_p8, %p431_p5 }
  0x41   : > { %p434_p2 = pnand %p433_p10, %p427_p3 }
  0xbe   : > { %v175_v3 = vpop.xlane.xlu0 %174 }
  0xbf   : > { %v180_v4 = vmul.f32 0.027777778, %v175_v3 }
  0xc0   : > { %v173_v10 = vpop.xlane.xlu1 %172 }
  0xc1   : > { %v181_v5 = vmul.f32 36.0, %v180_v4  ;;  %v179_v11 = vmul.f32 0.027777778, %v173_v10 }
  0xc2   : > { %v178_v6 = vpop.xlane.xlu0 %177 }
  0xc3   : > { %v182_v7 = vmul.f32 %v181_v5, %v180_v4  ;;  %v193_v16 = vmul.f32 13.155844, %v179_v11 }
  0xc5   : > { %v183_v8 = vsub.f32 %v178_v6, %v182_v7 }
  0xc7   : > { %v184_v9 = vmul.f32 0.028571429, %v183_v8 }
  0xc9   : > { %392 = vrsqrt.f32 %v184_v9  ;;  %vm187_vm0 = vcmp.eq.f32.partialorder %v184_v9, inf  ;;  %v190_v14 = vand.u32 2147483648, %v184_v9  ;;  %vm189_vm1 = vcmp.eq.f32.partialorder %v184_v9, 0.0 }
  0xd6   : > { %v393_v12 = vpop.eup %392 }
  0xd7   : > { %v186_v13 = vmul.f32 %v393_v12, %v184_v9 }
  0xd9   : > { %v188_v15 = vsel %vm187_vm0, %v184_v9, %v186_v13 }
  0xda   : > { %v191_v17 = vsel %vm189_vm1, %v190_v14, %v188_v15 }
  0xdb   : > { %v192_v18 = vmul.f32 12.987013, %v191_v17 }
  0xdd   : > { %v194_v19 = vsub.f32 %v192_v18, %v193_v16 }
  0xdf   : > { %394 = vrcp.f32 %v194_v19  ;;  %209 = vst.msk [vmem:[%s169_s4] sm:$0xff] %vm208_vm2, %v194_v19  ;;  %v195_v20 = vmin.f32 %v170_v0, %v194_v19  ;;  %v196_v21 = vsub.f32 0.0, %v194_v19  ;;  %v201_v34 = vmul.f32 0.14285715, %v194_v19 }
  0xe1   : > { %v197_v23 = vmax.f32 %v195_v20, %v196_v21 }
  0xec   : > { %v395_v22 = vpop.eup %394 }
  0xed   : > { %v199_v24 = vmul.f32 7.0, %v395_v22 }
  0xef   : > { %v202_v25 = vmul.f32 %v199_v24, %v197_v23 }
  0xf1   : > { %v340_v26 = vcvt.f32.s32 %v202_v25  ;;  %v338_v28 = vand.u32 2147483647, %v202_v25  ;;  %v343_v30 = vand.u32 2147483648, %v202_v25 }
  0xf3   : > { %v341_v27 = vcvt.s32.f32 %v340_v26  ;;  %vm339_vm3 = vcmp.lt.f32.partialorder %v338_v28, 8388608.0 }
  0xf5   : > { %v342_v29 = vand.u32 2147483647, %v341_v27 }
  0xf7   : > { %v344_v31 = vor.u32 %v343_v30, %v342_v29 }
  0xf9   : > { %v345_v32 = vsel %vm339_vm3, %v344_v31, %v202_v25 }
  0xfa   : > { %v204_v33 = vmax.f32 %v345_v32, -3.0 }
  0xfc   : > { %v205_v35 = vmin.f32 %v204_v33, 6.0 }
  0xfe   : > { %v206_v36 = vmul.f32 %v205_v35, %v201_v34 }
 0x100   : > { %207 = vst [vmem:[%s159_s6] sm:$0xff] %v206_v36 }
 0x101   : > { %437 = shalt.err (!%p434_p2)
}
 0x102   : > { %s438_s26 = scalar_lea.hbm %s226_s16, 128  ;;  %s442_s29 = scalar_lea.hbm %s658_s1, 256 }
 0x103   : > { %p439_p4 = scmp.ne.s32.totalorder %s226_s16, %s438_s26  ;;  %p443_p0 = scmp.lt.s32.totalorder %s226_s16, %s658_s1 }
 0x104   : > { %p444_p6 = scmp.lt.s32.totalorder %s442_s29, %s438_s26 }
 0x105   : > { %p440_p9 = pnand %p439_p4, %p670_p13 }
 0x106   : > { %p445_p11 = por %p444_p6, %p443_p0 }
 0x107   : > { %p441_p7 = pneg %p440_p9 }
 0x109   : > { %p446_p12 = pnand %p445_p11, %p441_p7 }
 0x10b   : > { %449 = shalt.err (!%p446_p12)
}
 0x10c   : > { %348 = dma.vmem_to_hbm [thread:$0]  (%p670_p13), %s229_s7, 128, %s226_s16, %s211_s17  }
 0x10d PF: > { %s243_s30 = sand.u32 1, %s476_s9   ;;  %p671_p1 = scmp.ne.s32.totalorder %s665_s22, 0 }
 0x10e   : > { %p672_p3 = scmp.ge.s32.totalorder %s488_s12, 2  ;;  %s244_s3 = scalar_lea.sflag [#allocation4], %s243_s30 }
 0x110   : > { %p355_p5 = pnand %p672_p3, %p671_p1 }
 0x112   : > { %p356_p8 = pneg %p355_p5 }
 0x114   : > { %471 = dma.done.wait (%p356_p8), %s244_s3, 128  }
 0x115   : > { %473 = vsyncadd (%p356_p8), %s244_s3, 4294967168  ;;  %p16_p10 = scmp.ge.s32.totalorder %s532_s15, 4   ;;  %s673_s9 = smov %s480_s10 }
 0x116   : > { %s674_s10 = smov %s484_s11  ;;  %s675_s11 = smov %s544_s18 }
 0x117   : > { %s676_s12 = smov %s532_s15  ;;  %18 = sbr.rel (!%p16_p10) target bundleno = 5 (0x5), region = 81 }
 0x11c   :  { %256 = vsyncpa [#allocation3], 1 }
 0x11d   :  { %258 = vsyncpa [#allocation3 + $0x1], 1 }
 0x11e   :  { %259 = vsyncpa [#allocation4], 1 }
 0x11f   :  { %261 = vsyncpa [#allocation4 + $0x1], 1 }

</bundles_post_ra>
